<compile_context>
chip_gen: v5e
topology: v5e:2x2
jax: 0.10.0
libtpu: 0.0.40
codegen_flags: <defaults>
</compile_context>

<pallas_src>
import functools

import jax
import jax.numpy as jnp
from jax.experimental import pallas as pl
from jax.experimental.pallas import tpu as pltpu

_LANE = 128
_MAX_BLOCK_ROWS = 4096  # 4096 x 128 f32 = 2 MiB per input per step


def _round_up(x, m):
    return (x + m - 1) // m * m


def _make_kernel(block_rows, rem_rows, partial_last, has_ignore, ignore_value):
    """MSE per-block partial-sum kernel with static configuration baked in."""
    nslab = block_rows // 8

    def _reduce(x):  # (block_rows, 128) f32 -> (8, 128) f32, pure VPU adds
        return x.reshape(nslab, 8, _LANE).sum(axis=0)

    def kernel(out_ref, tgt_ref, *o_refs):
        sum_ref = o_refs[0]
        cnt_ref = o_refs[1] if has_ignore else None
        i = pl.program_id(0)

        t_raw = tgt_ref[...]
        o = out_ref[...].astype(jnp.float32)
        t = t_raw.astype(jnp.float32)
        d = t - o
        sq = d * d

        if has_ignore:
            keep = t_raw != jnp.asarray(ignore_value, t_raw.dtype)
            # jnp.where (not multiply) so NaN/garbage never leaks into the sum.
            sq = jnp.where(keep, sq, jnp.float32(0.0))
            keep_f = keep.astype(jnp.float32)

        if partial_last:
            last = pl.num_programs(0) - 1

            @pl.when(i != last)
            def _():  # hot path: no mask work at all
                sum_ref[...] = _reduce(sq)
                if has_ignore:
                    cnt_ref[...] = _reduce(keep_f)

            @pl.when(i == last)
            def _():  # only the final block pays for the iota/mask
                row = jax.lax.broadcasted_iota(jnp.int32, (block_rows, _LANE), 0)
                m = row < rem_rows  # rem_rows is a compile-time constant
                sum_ref[...] = _reduce(jnp.where(m, sq, jnp.float32(0.0)))
                if has_ignore:
                    cnt_ref[...] = _reduce(jnp.where(m, keep_f, jnp.float32(0.0)))
        else:
            sum_ref[...] = _reduce(sq)
            if has_ignore:
                cnt_ref[...] = _reduce(keep_f)

    return kernel


@functools.partial(jax.jit, static_argnames=("ignore_value", "max_block_rows"))
def l2_loss(out, target, ignore_value=None, max_block_rows=_MAX_BLOCK_ROWS):
    """Pallas equivalent of L2Loss.forward (pre_calculation_function=None)."""
    has_ignore = ignore_value is not None

    out_f = out.reshape(-1)
    tgt_f = target.reshape(-1)
    n = out_f.shape[0]

    rows = n // _LANE          # complete 128-lane rows
    tail = n - rows * _LANE    # <128-element remainder
    n_main = rows * _LANE

    zero = jnp.float32(0.0)
    main_sum = zero
    main_cnt = zero
    tail_sum = zero
    tail_cnt = zero

    # ---------------- main body: stream (rows, 128) through Pallas ----------
    if rows > 0:
        if tail:
            # Prefix slice of a contiguous flat buffer — a view, not a pad copy.
            out_main = out_f[:n_main]
            tgt_main = tgt_f[:n_main]
        else:
            out_main, tgt_main = out_f, tgt_f
        out_2d = out_main.reshape(rows, _LANE)
        tgt_2d = tgt_main.reshape(rows, _LANE)

        # Sublane packing: 8 for 4-byte, 16 for 2-byte, 32 for 1-byte dtypes.
        pack = 8
        for a in (out, target):
            pack = max(pack, 32 // max(1, a.dtype.itemsize))
        block_rows = min(_round_up(max_block_rows, pack), _round_up(rows, pack))
        grid_k = pl.cdiv(rows, block_rows)
        partial_last = (rows % block_rows) != 0
        rem_rows = rows - (grid_k - 1) * block_rows  # valid rows in last block

        kernel = _make_kernel(block_rows, rem_rows, partial_last,
                              has_ignore, ignore_value)

        in_blk = pl.BlockSpec((block_rows, _LANE), lambda i: (i, 0))
        out_blk = pl.BlockSpec((8, _LANE), lambda i: (i, 0))

        out_shape = [jax.ShapeDtypeStruct((grid_k * 8, _LANE), jnp.float32)]
        out_specs = [out_blk]
        if has_ignore:
            out_shape.append(jax.ShapeDtypeStruct((grid_k * 8, _LANE), jnp.float32))
            out_specs.append(out_blk)

        partials = pl.pallas_call(
            kernel,
            out_shape=tuple(out_shape),
            grid_spec=pltpu.PrefetchScalarGridSpec(
                num_scalar_prefetch=0,
                grid=(grid_k,),
                in_specs=[in_blk, in_blk],
                out_specs=tuple(out_specs),
            ),
            compiler_params=pltpu.CompilerParams(
                dimension_semantics=("parallel",)
            ),
        )(out_2d, tgt_2d)

        main_sum = jnp.sum(partials[0])
        if has_ignore:
            main_cnt = jnp.sum(partials[1])

    # ---------------- tail epilogue (< 128 elements) in plain JAX -----------
    if tail:
        o_t = out_f[n_main:].astype(jnp.float32)
        t_t_raw = tgt_f[n_main:]
        t_t = t_t_raw.astype(jnp.float32)
        sq_t = (t_t - o_t) ** 2
        if has_ignore:
            keep_t = t_t_raw != jnp.asarray(ignore_value, t_t_raw.dtype)
            tail_sum = jnp.sum(jnp.where(keep_t, sq_t, zero))
            tail_cnt = jnp.sum(keep_t.astype(jnp.float32))
        else:
            tail_sum = jnp.sum(sq_t)

    total_sum = main_sum + tail_sum
    if has_ignore:
        total_cnt = main_cnt + tail_cnt  # NaN if nothing kept, matching torch
    else:
        total_cnt = jnp.float32(n)
    return total_sum / total_cnt


# TODO(synk): pre_calculation_function is an arbitrary user callable in the
# PyTorch module; apply it (if any) in plain JAX before calling l2_loss.


if __name__ == "__main__":
    key = jax.random.PRNGKey(0)
    k1, k2, k3, k4, k5, k6 = jax.random.split(key, 6)

    # 1) lane-aligned f32 NCHW input (n = 2048)
    x = jax.random.normal(k1, (2, 4, 16, 16), dtype=jnp.float32)
    t = jax.random.normal(k2, (2, 4, 16, 16), dtype=jnp.float32)
    loss = l2_loss(x, t)
    jax.block_until_ready(loss)
    ref = jnp.mean((t.reshape(-1) - x.reshape(-1)) ** 2)
    assert jnp.allclose(loss, ref, rtol=1e-5, atol=1e-6), (loss, ref)

    # 2) ignore_value path
    t_ign = t.at[0, 0, 0, :].set(-100.0)
    loss_i = l2_loss(x, t_ign, ignore_value=-100.0)
    jax.block_until_ready(loss_i)
    keep = t_ign.reshape(-1) != -100.0
    ref_i = jnp.mean((t_ign.reshape(-1)[keep] - x.reshape(-1)[keep]) ** 2)
    assert jnp.allclose(loss_i, ref_i, rtol=1e-5, atol=1e-6), (loss_i, ref_i)

    # 3) non-lane-aligned n = 105 (handled fully by the jnp tail epilogue)
    xs = jax.random.normal(k3, (3, 5, 7), dtype=jnp.float32)
    ts = jax.random.normal(k4, (3, 5, 7), dtype=jnp.float32)
    loss_s = l2_loss(xs, ts)
    jax.block_until_ready(loss_s)
    ref_s = jnp.mean((ts.reshape(-1) - xs.reshape(-1)) ** 2)
    assert jnp.allclose(loss_s, ref_s, rtol=1e-5, atol=1e-6), (loss_s, ref_s)

    # 4) partial last block + tail (n = 4488 -> 35 full rows + 8 remainder)
    xp = jax.random.normal(k5, (2, 4, 17, 33), dtype=jnp.float32)
    tp = jax.random.normal(k6, (2, 4, 17, 33), dtype=jnp.float32)
    loss_p = l2_loss(xp, tp)
    jax.block_until_ready(loss_p)
    ref_p = jnp.mean((tp.reshape(-1) - xp.reshape(-1)) ** 2)
    assert jnp.allclose(loss_p, ref_p, rtol=1e-5, atol=1e-6), (loss_p, ref_p)

    # 5) same input, tiny block cap -> multi-step grid (exercises both branches)
    loss_g = l2_loss(xp, tp, max_block_rows=16)
    jax.block_until_ready(loss_g)
    assert jnp.allclose(loss_g, ref_p, rtol=1e-5, atol=1e-6), (loss_g, ref_p)

    # 6) bf16 inputs with rows not a multiple of 16 (packing-aligned block)
    xb = jax.random.normal(k1, (5, 512), dtype=jnp.bfloat16)
    tb = jax.random.normal(k2, (5, 512), dtype=jnp.bfloat16)
    loss_b = l2_loss(xb, tb)
    jax.block_until_ready(loss_b)
    ref_b = jnp.mean((tb.astype(jnp.float32).reshape(-1)
                      - xb.astype(jnp.float32).reshape(-1)) ** 2)
    assert jnp.allclose(loss_b, ref_b, rtol=1e-4, atol=1e-5), (loss_b, ref_b)

    print("KERNEL_OK")
</pallas_src>

<mosaic_0001>
module attributes {stable_mosaic.version = 11 : i64} {
  func.func @kernel(%arg0: i32, %arg1: memref<16x128xf32, #tpu.memory_space<vmem>>, %arg2: memref<16x128xf32, #tpu.memory_space<vmem>>, %arg3: memref<8x128xf32, #tpu.memory_space<vmem>>) attributes {dimension_semantics = [#tpu.dimension_semantics<parallel>], iteration_bounds = array<i64: 1>, scalar_prefetch = 0 : i64, scratch_operands = 0 : i64, tpu.core_type = #tpu.core_type<tc>, window_params = [{transform_indices = @transform_0, window_bounds = array<i64: 16, 128>}, {transform_indices = @transform_1, window_bounds = array<i64: 16, 128>}, {transform_indices = @transform_2, window_bounds = array<i64: 8, 128>}]} {
    %c0 = arith.constant 0 : index
    %c0_0 = arith.constant 0 : index
    %0 = vector.load %arg2[%c0, %c0_0] : memref<16x128xf32, #tpu.memory_space<vmem>>, vector<16x128xf32>
    %c0_1 = arith.constant 0 : index
    %c0_2 = arith.constant 0 : index
    %1 = vector.load %arg1[%c0_1, %c0_2] : memref<16x128xf32, #tpu.memory_space<vmem>>, vector<16x128xf32>
    %2 = arith.subf %0, %1 : vector<16x128xf32>
    %3 = arith.mulf %2, %2 : vector<16x128xf32>
    %4 = vector.shape_cast %3 : vector<16x128xf32> to vector<2x8x128xf32>
    %cst = arith.constant dense<0.000000e+00> : vector<8x128xf32>
    %5 = vector.multi_reduction <add>, %4, %cst [0] : vector<2x8x128xf32> to vector<8x128xf32>
    %c0_3 = arith.constant 0 : index
    %c0_4 = arith.constant 0 : index
    %6 = vector.load %arg3[%c0_3, %c0_4] : memref<8x128xf32, #tpu.memory_space<vmem>>, vector<8x128xf32>
    tpu.vector_store %arg3[%c0_3, %c0_4], %5 {strides = array<i32>} : memref<8x128xf32, #tpu.memory_space<vmem>>, vector<8x128xf32>,
    return
  }
  func.func @transform_0(%arg0: i32) -> (i32, i32) {
    %c0_i32 = arith.constant 0 : i32
    %c0_i32_0 = arith.constant 0 : i32
    return %arg0, %c0_i32 : i32, i32
  }
  func.func @transform_1(%arg0: i32) -> (i32, i32) {
    %c0_i32 = arith.constant 0 : i32
    %c0_i32_0 = arith.constant 0 : i32
    return %arg0, %c0_i32 : i32, i32
  }
  func.func @transform_2(%arg0: i32) -> (i32, i32) {
    %c0_i32 = arith.constant 0 : i32
    %c0_i32_0 = arith.constant 0 : i32
    return %arg0, %c0_i32 : i32, i32
  }
}

</mosaic_0001>

<bundles_post_ra>
// kernel: l2_loss.1
= control target key start
LH: loop header
LB: loop body
LE: loop exit
PB: predicated region body
PF: predicated region fallthrough
CT: control target
= control target key end

     0   :  { %s55_s0 = inlined_call_operand.vmem [shape: f32[16,128], index: 0, kind: input, shape index: {}]   ;;  %s56_s1 = inlined_call_operand.vmem [shape: f32[16,128], index: 1, kind: input, shape index: {}]   ;;  %s57_s2 = inlined_call_operand.vmem [shape: f32[8,128], index: 2, kind: output, shape index: {}]  }
   0x1   :  { %v11_v0 = vld [vmem:[%s56_s1] sm:$0xff]  ;;  %v12_v1 = vld [vmem:[%s56_s1 + $0x8] sm:$0xff] }
   0x2   :  { %v13_v2 = vld [vmem:[%s55_s0] sm:$0xff]  ;;  %v14_v3 = vld [vmem:[%s55_s0 + $0x8] sm:$0xff] }
   0x3   :  { %v15_v4 = vsub.f32 %v11_v0, %v13_v2  ;;  %v16_v5 = vsub.f32 %v12_v1, %v14_v3 }
   0x5   :  { %v17_v6 = vmul.f32 %v15_v4, %v15_v4  ;;  %v18_v7 = vmul.f32 %v16_v5, %v16_v5 }
   0x7   :  { %v19_v8 = vadd.f32 %v18_v7, %v17_v6 }
   0x9   :  { %20 = vst [vmem:[%s57_s2] sm:$0xff] %v19_v8 }

</bundles_post_ra>
